<compile_context>
chip_gen: v5e
topology: v5e:2x2
jax: 0.10.0
libtpu: 0.0.40
codegen_flags: <defaults>
</compile_context>

<pallas_src>
import functools

import jax
import jax.numpy as jnp
import numpy as np
from jax.experimental import pallas as pl
from jax.experimental.pallas import tpu as pltpu


# ----------------------------------------------------------------------------- kernel
def _self_attention_kernel(a_ref, vf_ref, x_ref, *out_refs, with_attn):
    """One (batch, query-time tile) grid step.

    a_ref : (1, Tp, C)  bf16   A  = K_p^T @ W_q            (W_q folded into pooled K)
    vf_ref: (1, C, Tp)  bf16   Vf = gamma * W_f @ V_p      (W_f, gamma folded into pooled V)
    x_ref : (1, C, tT)  f32    input tile (also the residual)
    out_refs[0]: (1, C, tT)  f32   y tile
    out_refs[1]: (1, Tp, tT) f32   attention-map tile (only if with_attn)
    """
    y_ref = out_refs[0]
    x = x_ref[0]                                                  # (C, tT) f32

    # scores[p, t] = sum_c A[p, c] * x[c, t]   (== K_p^T @ (W_q x), scale == 1.0)
    scores = jnp.dot(a_ref[0], x.astype(jnp.bfloat16),
                     preferred_element_type=jnp.float32)          # (Tp, tT)

    # softmax over the pooled-key (Tp) axis == PyTorch F.softmax(dim=1) on (B, Tp, T).
    m = jnp.max(scores, axis=0, keepdims=True)
    e = jnp.exp(scores - m)
    attn = e * pl.reciprocal(jnp.sum(e, axis=0, keepdims=True), approx=True)

    # out[c, t] = sum_p Vf[c, p] * attn[p, t]  (== gamma * W_f (V_p @ attn))
    out = jnp.dot(vf_ref[0], attn.astype(jnp.bfloat16),
                  preferred_element_type=jnp.float32)             # (C, tT)

    y_ref[0] = out + x
    if with_attn:
        out_refs[1][0] = attn


# ------------------------------------------------------------------------ pre-pass
def _precompute(x, wq, wk, wv, wf, gamma):
    """Per-batch folded operands (plain XLA, tiny vs the attention itself).

    For a 1x1 conv, MaxPool1d(4) of the conv output is the max over 4 strided phases.
    Returns A = K_p^T @ W_q (B, Tp, C) and Vf = gamma * W_f @ V_p (B, C, Tp), bf16.
    """
    B, C, T = x.shape
    Tp = T // 4
    k = jnp.einsum('dc,bct->bdt', wk, x)                    # (B, dk, T)  f32
    v = jnp.einsum('vc,bct->bvt', wv, x)                    # (B, C/2, T) f32
    kp = jnp.max(k.reshape(B, k.shape[1], Tp, 4), axis=-1)  # (B, dk, Tp)
    vp = jnp.max(v.reshape(B, v.shape[1], Tp, 4), axis=-1)  # (B, C/2, Tp)
    a = jnp.einsum('bdp,dc->bpc', kp, wq)                   # (B, Tp, C)
    vf = gamma * jnp.einsum('oc,bvp->bop', wf, vp)          # (B, C, Tp)
    return a.astype(jnp.bfloat16), vf.astype(jnp.bfloat16)


# -------------------------------------------------------------------- tiling helpers
def _vmem_live_bytes(C, Tp, tT, with_attn):
    """Approximate live VMEM per grid step (double-buffered blocks + temporaries)."""
    b = 2 * C * tT * 4                       # x blocks
    b += 2 * C * tT * 4                      # y blocks
    if with_attn:
        b += 2 * Tp * tT * 4                 # attention-map blocks
    b += 4 * Tp * tT * 4                     # scores / exp / attn f32 + bf16 temporaries
    b += 2 * (Tp * C + C * Tp) * 2           # A, Vf blocks (bf16)
    return b


def _choose_time_tile(T, Tp, C, with_attn, budget, max_tile):
    """Largest lane-dense (multiple of 128, or full-T) query tile that fits `budget`."""
    if T <= max_tile and _vmem_live_bytes(C, Tp, T, with_attn) <= budget:
        return T
    cands = [c for c in (2048, 1536, 1024, 768, 512, 384, 256, 128)
             if c <= max_tile and c < T and T % c == 0]
    for c in cands:
        if _vmem_live_bytes(C, Tp, c, with_attn) <= budget:
            return c
    # TODO(synk): if T has no 128-multiple divisor (or nothing fits), fall back to the
    # smallest candidate / untiled T instead of padding T in the wrapper.
    return cands[-1] if cands else T


# ------------------------------------------------------------------------- wrapper
@functools.partial(jax.jit, static_argnames=("max_time_tile", "return_attention_map"))
def self_attention(x, wq, wk, wv, wf, gamma, *, max_time_tile=None,
                   return_attention_map=True):
    """x: (B, C, T) f32.  Returns (y, attention_map) or just y.

    y: (B, C, T) f32 = gamma * final(V_p @ softmax(K_p^T Q)) + x
    attention_map: (B, T//4, T) f32
    """
    B, C, T = x.shape
    assert T % 4 == 0, "MaxPool1d(4) requires T divisible by 4 for exact semantics here"
    Tp = T // 4

    a_bf, vf_bf = _precompute(x, wq, wk, wv, wf, gamma)

    # Generation-aware VMEM budget (v5e/v6e: 128 MiB physical; v7x: 64 MiB).
    try:
        vmem_phys = pltpu.get_tpu_info().vmem_capacity_bytes
    except Exception:
        vmem_phys = 64 * 2**20
    vmem_cap = int(vmem_phys * 3 // 4)              # ~96 MiB on v5e/v6e, ~48 MiB on v7x
    if max_time_tile is None:
        max_time_tile = 2048 if vmem_phys >= 96 * 2**20 else 1024

    tT = _choose_time_tile(T, Tp, C, return_attention_map,
                           budget=int(vmem_cap * 0.7), max_tile=max_time_tile)
    nT = T // tT
    live = _vmem_live_bytes(C, Tp, tT, return_attention_map)
    vmem_limit = int(min(vmem_cap, max(32 * 2**20, 2 * live)))

    y_spec = pl.BlockSpec((1, C, tT), lambda b, t: (b, 0, t))
    if return_attention_map:
        out_shape = (jax.ShapeDtypeStruct((B, C, T), jnp.float32),
                     jax.ShapeDtypeStruct((B, Tp, T), jnp.float32))
        out_specs = (y_spec, pl.BlockSpec((1, Tp, tT), lambda b, t: (b, 0, t)))
    else:
        out_shape = jax.ShapeDtypeStruct((B, C, T), jnp.float32)
        out_specs = y_spec

    kernel = functools.partial(_self_attention_kernel,
                               with_attn=return_attention_map)

    return pl.pallas_call(
        kernel,
        out_shape=out_shape,
        grid=(B, nT),
        in_specs=[
            pl.BlockSpec((1, Tp, C), lambda b, t: (b, 0, 0)),   # A  (per batch, bf16)
            pl.BlockSpec((1, C, Tp), lambda b, t: (b, 0, 0)),   # Vf (per batch, bf16)
            pl.BlockSpec((1, C, tT), lambda b, t: (b, 0, t)),   # x tile (f32)
        ],
        out_specs=out_specs,
        compiler_params=pltpu.CompilerParams(
            # No cross-tile carry anymore -> both axes can shard across TensorCores.
            dimension_semantics=("parallel", "parallel"),
            vmem_limit_bytes=vmem_limit,
        ),
    )(a_bf, vf_bf, x)


# ------------------------------------------------------------------------ reference
def _xavier_uniform(key, out_c, in_c):
    # gain = calculate_gain('leaky_relu', param=1) = 1  (act_alpha=-1 -> a=1)
    limit = float(np.sqrt(6.0 / (in_c + out_c)))
    return jax.random.uniform(key, (out_c, in_c), jnp.float32, -limit, limit)


def _reference(x, wq, wk, wv, wf, gamma):
    """Pure-JAX reference matching SelfAttention.forward.  It mirrors the kernel's
    algebraic folding and bf16 matmul-operand rounding (accumulation stays f32) so
    the comparison isolates kernel bugs rather than bf16 noise."""
    hp = jax.lax.Precision.HIGHEST
    a_bf, vf_bf = _precompute(x, wq, wk, wv, wf, gamma)
    a = a_bf.astype(jnp.float32)
    vf = vf_bf.astype(jnp.float32)
    xb = x.astype(jnp.bfloat16).astype(jnp.float32)
    scores = jnp.einsum('bpc,bct->bpt', a, xb, precision=hp)        # (B, Tp, T)
    attn = jax.nn.softmax(scores, axis=1)
    ab = attn.astype(jnp.bfloat16).astype(jnp.float32)
    out = jnp.einsum('bcp,bpt->bct', vf, ab, precision=hp)          # (B, C, T)
    return out + x, attn


if __name__ == "__main__":
    B, C, T = 2, 16, 512                     # channels_in = 16, seq = 512
    d_key = max(C // 8, 2)                   # = 2
    C_half = C // 2                          # = 8

    key = jax.random.PRNGKey(0)
    kx, kq, kk, kv, kf = jax.random.split(key, 5)

    x = jax.random.normal(kx, (B, C, T), jnp.float32)
    wq = _xavier_uniform(kq, d_key, C)       # query_conv weight (1x1 conv, bias=False)
    wk = _xavier_uniform(kk, d_key, C)       # key_conv weight
    wv = _xavier_uniform(kv, C_half, C)      # value_conv weight
    wf = _xavier_uniform(kf, C, C_half)      # final_conv weight

    # gamma = 0.0 is the module init; 0.7 exercises the attention output path.
    # max_time_tile=128 forces T-tiling (4 query tiles) at these small shapes.
    for gamma in (0.0, 0.7):
        y, attn_map = self_attention(x, wq, wk, wv, wf, gamma, max_time_tile=128)
        jax.block_until_ready((y, attn_map))
        y_ref, attn_ref = _reference(x, wq, wk, wv, wf, gamma)
        assert np.allclose(np.asarray(attn_map), np.asarray(attn_ref), atol=1e-2, rtol=1e-2)
        assert np.allclose(np.asarray(y), np.asarray(y_ref), atol=1e-2, rtol=1e-2)

    # Default (untiled at this T) path, attention-map-free output, exact residual
    # check at gamma = 0 (Vf is exactly zero, so y == x bit-exactly).
    y0 = self_attention(x, wq, wk, wv, wf, 0.0, return_attention_map=False)
    jax.block_until_ready(y0)
    assert np.allclose(np.asarray(y0), np.asarray(x), atol=1e-6, rtol=1e-6)

    print("KERNEL_OK")
</pallas_src>

<mosaic_0001>
module attributes {stable_mosaic.version = 11 : i64} {
  func.func @_self_attention_kernel(%arg0: i32, %arg1: i32, %arg2: memref<1x128x16xbf16, #tpu.memory_space<vmem>>, %arg3: memref<1x16x128xbf16, #tpu.memory_space<vmem>>, %arg4: memref<1x16x128xf32, #tpu.memory_space<vmem>>, %arg5: memref<1x16x128xf32, #tpu.memory_space<vmem>>, %arg6: memref<1x128x128xf32, #tpu.memory_space<vmem>>) attributes {dimension_semantics = [#tpu.dimension_semantics<parallel>, #tpu.dimension_semantics<parallel>], iteration_bounds = array<i64: 2, 4>, scalar_prefetch = 0 : i64, scratch_operands = 0 : i64, tpu.core_type = #tpu.core_type<tc>, window_params = [{transform_indices = @transform_0, window_bounds = array<i64: 1, 128, 16>}, {transform_indices = @transform_1, window_bounds = array<i64: 1, 16, 128>}, {transform_indices = @transform_2, window_bounds = array<i64: 1, 16, 128>}, {transform_indices = @transform_3, window_bounds = array<i64: 1, 16, 128>}, {transform_indices = @transform_4, window_bounds = array<i64: 1, 128, 128>}]} {
    %c0 = arith.constant 0 : index
    %c0_0 = arith.constant 0 : index
    %c0_1 = arith.constant 0 : index
    %0 = vector.load %arg4[%c0, %c0_0, %c0_1] : memref<1x16x128xf32, #tpu.memory_space<vmem>>, vector<1x16x128xf32>
    %1 = vector.shape_cast %0 : vector<1x16x128xf32> to vector<16x128xf32>
    %c0_2 = arith.constant 0 : index
    %c0_3 = arith.constant 0 : index
    %c0_4 = arith.constant 0 : index
    %2 = vector.load %arg2[%c0_2, %c0_3, %c0_4] : memref<1x128x16xbf16, #tpu.memory_space<vmem>>, vector<1x128x16xbf16>
    %3 = vector.shape_cast %2 : vector<1x128x16xbf16> to vector<128x16xbf16>
    %4 = arith.truncf %1 : vector<16x128xf32> to vector<16x128xbf16>
    %cst = arith.constant dense<0.000000e+00> : vector<128x128xf32>
    %5 = tpu.matmul %3, %4, %cst {dimension_numbers = #tpu.dot_dimension_numbers<[1], [0], [0], [1], [0, 0, 1, 1], [], []>} : vector<128x16xbf16>, vector<16x128xbf16>, vector<128x128xf32> -> vector<128x128xf32>
    %cst_5 = arith.constant dense<0xFF800000> : vector<128xf32>
    %6 = vector.multi_reduction <maximumf>, %5, %cst_5 [0] : vector<128x128xf32> to vector<128xf32>
    %7 = vector.shape_cast %6 : vector<128xf32> to vector<1x128xf32>
    %8 = vector.broadcast %7 : vector<1x128xf32> to vector<128x128xf32>
    %9 = arith.subf %5, %8 : vector<128x128xf32>
    %10 = math.exp %9 : vector<128x128xf32>
    %cst_6 = arith.constant dense<0.000000e+00> : vector<128xf32>
    %11 = vector.multi_reduction <add>, %10, %cst_6 [0] : vector<128x128xf32> to vector<128xf32>
    %12 = vector.shape_cast %11 : vector<128xf32> to vector<1x128xf32>
    %13 = tpu.reciprocal %12 {approx = true} : vector<1x128xf32> -> vector<1x128xf32>
    %14 = vector.broadcast %13 : vector<1x128xf32> to vector<128x128xf32>
    %15 = arith.mulf %10, %14 : vector<128x128xf32>
    %c0_7 = arith.constant 0 : index
    %c0_8 = arith.constant 0 : index
    %c0_9 = arith.constant 0 : index
    %16 = vector.load %arg3[%c0_7, %c0_8, %c0_9] : memref<1x16x128xbf16, #tpu.memory_space<vmem>>, vector<1x16x128xbf16>
    %17 = vector.shape_cast %16 : vector<1x16x128xbf16> to vector<16x128xbf16>
    %18 = arith.truncf %15 : vector<128x128xf32> to vector<128x128xbf16>
    %cst_10 = arith.constant dense<0.000000e+00> : vector<16x128xf32>
    %19 = tpu.matmul %17, %18, %cst_10 {dimension_numbers = #tpu.dot_dimension_numbers<[1], [0], [0], [1], [0, 0, 1, 1], [], []>} : vector<16x128xbf16>, vector<128x128xbf16>, vector<16x128xf32> -> vector<16x128xf32>
    %20 = arith.addf %19, %1 : vector<16x128xf32>
    %c0_11 = arith.constant 0 : index
    %c0_12 = arith.constant 0 : index
    %c0_13 = arith.constant 0 : index
    %21 = vector.load %arg5[%c0_11, %c0_12, %c0_13] : memref<1x16x128xf32, #tpu.memory_space<vmem>>, vector<1x16x128xf32>
    %22 = vector.shape_cast %21 : vector<1x16x128xf32> to vector<16x128xf32>
    %23 = vector.shape_cast %20 : vector<16x128xf32> to vector<1x16x128xf32>
    tpu.vector_store %arg5[%c0_11, %c0_12, %c0_13], %23 {strides = array<i32>} : memref<1x16x128xf32, #tpu.memory_space<vmem>>, vector<1x16x128xf32>,
    %c0_14 = arith.constant 0 : index
    %c0_15 = arith.constant 0 : index
    %c0_16 = arith.constant 0 : index
    %24 = vector.load %arg6[%c0_14, %c0_15, %c0_16] : memref<1x128x128xf32, #tpu.memory_space<vmem>>, vector<1x128x128xf32>
    %25 = vector.shape_cast %24 : vector<1x128x128xf32> to vector<128x128xf32>
    %26 = vector.shape_cast %15 : vector<128x128xf32> to vector<1x128x128xf32>
    tpu.vector_store %arg6[%c0_14, %c0_15, %c0_16], %26 {strides = array<i32>} : memref<1x128x128xf32, #tpu.memory_space<vmem>>, vector<1x128x128xf32>,
    return
  }
  func.func @transform_0(%arg0: i32, %arg1: i32) -> (i32, i32, i32) {
    %c0_i32 = arith.constant 0 : i32
    %c0_i32_0 = arith.constant 0 : i32
    %c0_i32_1 = arith.constant 0 : i32
    return %arg0, %c0_i32, %c0_i32_0 : i32, i32, i32
  }
  func.func @transform_1(%arg0: i32, %arg1: i32) -> (i32, i32, i32) {
    %c0_i32 = arith.constant 0 : i32
    %c0_i32_0 = arith.constant 0 : i32
    %c0_i32_1 = arith.constant 0 : i32
    return %arg0, %c0_i32, %c0_i32_0 : i32, i32, i32
  }
  func.func @transform_2(%arg0: i32, %arg1: i32) -> (i32, i32, i32) {
    %c0_i32 = arith.constant 0 : i32
    %c0_i32_0 = arith.constant 0 : i32
    return %arg0, %c0_i32, %arg1 : i32, i32, i32
  }
  func.func @transform_3(%arg0: i32, %arg1: i32) -> (i32, i32, i32) {
    %c0_i32 = arith.constant 0 : i32
    %c0_i32_0 = arith.constant 0 : i32
    return %arg0, %c0_i32, %arg1 : i32, i32, i32
  }
  func.func @transform_4(%arg0: i32, %arg1: i32) -> (i32, i32, i32) {
    %c0_i32 = arith.constant 0 : i32
    %c0_i32_0 = arith.constant 0 : i32
    return %arg0, %c0_i32, %arg1 : i32, i32, i32
  }
}

</mosaic_0001>

<bundles_post_ra>
// kernel: self_attention.1
= control target key start
LH: loop header
LB: loop body
LE: loop exit
PB: predicated region body
PF: predicated region fallthrough
CT: control target
= control target key end

     0   :  { %s1407_s0 = inlined_call_operand.vmem [shape: bf16[2,128,16], index: 0, kind: input, shape index: {}]   ;;  %s1408_s1 = inlined_call_operand.vmem [shape: bf16[2,16,128], index: 1, kind: input, shape index: {}]   ;;  %s1409_s2 = inlined_call_operand.vmem [shape: f32[2,16,512], index: 2, kind: input, shape index: {}]   ;;  %s1410_s3 = inlined_call_operand.hbm [shape: f32[2,16,512], index: 3, kind: output, shape index: {0}]   ;;  %s1411_s4 = inlined_call_operand.hbm [shape: f32[2,128,512], index: 4, kind: output, shape index: {1}]  }
   0x1   :  { %1414 = sst [smem:[#allocation10_spill]] %s1407_s0 }
   0x2   :  { %1415 = sst [smem:[#allocation11_spill]] %s1408_s1 }
   0x3   :  { %1416 = sst [smem:[#allocation12_spill]] %s1409_s2 }
   0x4   :  { %10 = vsyncpa [#allocation4], 0 }
   0x5   :  { %12 = vsyncpa [#allocation4 + $0x1], 0 }
   0x6   :  { %13 = vsyncpa [#allocation6], 0 }
   0x7   :  { %15 = vsyncpa [#allocation6 + $0x1], 0  ;;  %s1126_s15 = smov 0   ;;  %s1128_s16 = smov 0  }
   0x8   :  { %s1130_s17 = smov 0   ;;  %s1132_s18 = smov 0  }
   0x9   :  { %s1134_s19 = smov 0   ;;  %s1136_s20 = smov 0  }
   0xa   :  { %s1138_s21 = smov 0   ;;  %s1140_s22 = smov 0  }
   0xb LB: > { %s777_s23 = sadd.s32 4294967295, %s1096_s22   ;;  %s778_s24 = sadd.s32 4294967294, %s1096_s22   ;;  %s1096_s22 = sphi %s1140_s22, %s21_s22   ;;  %s1092_s21 = sphi %s1138_s21, %s1432_s21   ;;  %s1088_s20 = sphi %s1136_s20, %s1431_s20   ;;  %s1084_s19 = sphi %s1134_s19, %s1430_s19   ;;  %s1080_s18 = sphi %s1132_s18, %s1429_s18   ;;  %s1076_s17 = sphi %s1130_s17, %s1428_s17   ;;  %s1072_s16 = sphi %s1128_s16, %s1427_s16   ;;  %s1068_s15 = sphi %s1126_s15, %s1426_s15  }
   0xc   : > { %s30_s25 = sadd.s32 1, %s1088_s20  ;;  %s33_s26 = sadd.s32 1, %s1092_s21 }
   0xd   : > { %p31_p0 = scmp.ge.s32.totalorder %s30_s25, 4  ;;  %p101_p1 = scmp.ne.s32.totalorder %s1076_s17, %s1072_s16 }
   0xe   : > { %p102_p2 = scmp.eq.s32.totalorder %s1096_s22, 0  ;;  %p133_p5 = scmp.eq.s32.totalorder %s777_s23, 7 }
   0xf   : > { %s1434_s25 = smov (%p31_p0, %s30_s25), 0  ;;  %s1436_s26 = smov (!%p31_p0, %s33_s26), %s1092_s21 }
  0x10   : > { %s90_s27 = ssub.s32 %s1088_s20, %s1434_s25  ;;  %p1178_p3 = por %p102_p2, %p101_p1 }
  0x11   : > { %p35_p4 = scmp.ge.s32.totalorder %s1436_s26, 2  ;;  %p138_p6 = scmp.ne.s32.totalorder %s1072_s16, %s1068_s15 }
  0x12   : > { %p139_p7 = scmp.eq.s32.totalorder %s778_s24, 7  ;;  %p1186_p8 = por %p133_p5, %p101_p1 }
  0x13   : > { %s1438_s26 = smov (%p35_p4, %s1436_s26), 0  ;;  %s94_s7 = sadd.s32 1, %s1076_s17 }
  0x14   : > { %1418 = sst [smem:[#allocation9_spill]] %s1438_s26  ;;  %p1190_p9 = por %p139_p7, %p138_p6 }
  0x15   : > { %s89_s5 = ssub.s32 %s1092_s21, %s1438_s26  ;;  %p780_p11 = scmp.ge.s32.totalorder %s1096_s22, 8 }
  0x16   : > { %s91_s6 = sor.u32 %s90_s27, %s89_s5 }
  0x17   : > { %p92_p10 = scmp.eq.s32.totalorder %s91_s6, 0  ;;  %183 = sbr.rel (%p780_p11) target bundleno = 40 (0x28), region = 16 }
  0x19   : > { %s1198_s8 = scalar_select %p92_p10, %s1076_s17, %s94_s7  }
  0x1c   : > { %202 = sbr.rel (!%p1178_p3) target bundleno = 40 (0x28), region = 28  ;;  %s204_s9 = sand.u32 (%p1178_p3), 1, %s1076_s17  }
  0x1d   : > { %s782_s10 = sshll.u32 (%p1178_p3), %s1092_s21, 3  ;;  %s781_s11 = sshll.u32 (%p1178_p3), %s204_s9, 4 }
  0x1e   : > { %s208_s12 = sadd.s32 (%p1178_p3), %s1088_s20, %s782_s10  ;;  %s1421_s2 = sld [smem:[#allocation12_spill]] (%p1178_p3) }
  0x1f   : > { %s783_s13 = sshll.u32 (%p1178_p3), %s208_s12, 3  ;;  %s206_s27 = scalar_lea.vmem (%p1178_p3), [#allocation2], %s781_s11 }
  0x24   : > { %s210_s24 = scalar_lea.vmem %s1421_s2, %s783_s13 }
  0x25   : > { %v241_v0 = vld [vmem:[%s210_s24] sm:$0xff] }
  0x26   : > { %v243_v1 = vld [vmem:[%s210_s24 + $0x20] sm:$0xff]  ;;  %242 = vst [vmem:[%s206_s27] sm:$0xff] %v241_v0 }
  0x27   : > { %244 = vst [vmem:[%s206_s27 + $0x8] sm:$0xff] %v243_v1 }
  0x28 PF: > { %p784_p12 = scmp.ge.s32.totalorder %s1096_s22, 1  ;;  %p249_p13 = scmp.lt.s32.totalorder %s1096_s22, 9 }
  0x2a   : > { %p250_p0 = pnand %p784_p12, %p249_p13 }
  0x2b   : > { %s1212_s28 = sand.u32 (!%p250_p0), 1, %s1072_s16   ;;  %p296_p1 = scmp.lt.s32.totalorder (!%p250_p0), %s1084_s19, 1 }
  0x2c   : > { %253 = sbr.rel (%p250_p0) target bundleno = 482 (0x1e2), region = 66  ;;  %s1412_s5 = sshll.u32 (!%p250_p0), %s1212_s28, 4 }
  0x2d   : > { %s258_s6 = scalar_lea.vmem (!%p250_p0), [#allocation2], %s1412_s5  ;;  %s1422_s0 = sld [smem:[#allocation10_spill]] (!%p250_p0) }
  0x2e   : > { %s787_s13 = sshll.u32 (!%p250_p0), %s1212_s28, 7  ;;  %s1423_s1 = sld [smem:[#allocation11_spill]] (!%p250_p0) }
  0x2f   : > { %s1308_s14 = scalar_lea.vmem (!%p250_p0), [#allocation5], %s787_s13 }
  0x31   : > { %v1218_v2 = vld [vmem:[%s258_s6] sm:$0xff]  ;;  %v1220_v3 = vld [vmem:[%s258_s6 + $0x8] sm:$0xff]  ;;  %s1225_s7 = scalar_select %p296_p1, %s1084_s19, 1  ;;  %vm366_vm0 = vcmask 130048  }
  0x32   : > { %v325_v4 = vpack.c.bf16 %v1220_v3, %v1218_v2 }
  0x33   : > { %s844_s9 = sshll.u32 %s1225_s7, 6  ;;  %s845_s23 = sshll.u32 %s1225_s7, 3 }
  0x34   : > { %398 = vmatpush.bf16.msra.mxu0 %v325_v4  ;;  %855 = vmatpush.bf16.msra.mxu2 %v325_v4  ;;  %s300_s12 = scalar_lea.vmem %s1422_s0, %s844_s9  ;;  %s305_s6 = scalar_lea.vmem %s1423_s1, %s845_s23 }
  0x35   : > { %856 = vmatpush.bf16.msra.mxu3 %v325_v4  ;;  %v846_v5 = vld [vmem:[%s300_s12] sm:$0xff]  ;;  %v849_v6 = vld [vmem:[%s300_s12 + $0x18] sm:$0xff]  ;;  %v852_v7 = vld [vmem:[%s300_s12 + $0x30] sm:$0xff]  ;;  %s840_s9 = sshll.u32 %s1084_s19, 6  ;;  %s632_s0 = sshll.u32 %s1308_s14, 4  ;;  %s633_s0 = int_to_ptr.vmem [resolvable:$true] %s632_s0 }
  0x36   : > { %v847_v8 = vld [vmem:[%s300_s12 + $0x8] sm:$0xff]  ;;  %v850_v9 = vld [vmem:[%s300_s12 + $0x20] sm:$0xff]  ;;  %v853_v10 = vld [vmem:[%s300_s12 + $0x38] sm:$0xff]  ;;  %s629_s10 = sadd.s32 %s1080_s18, %s840_s9  ;;  %s601_s7 = scalar_lea.sflag [#allocation6], %s1212_s28 }
  0x37   : > { %824 = vmatmul.msk.bf16.vlgmr.msra.gmra.mxu0 %vm366_vm0, %v846_v5  ;;  %827 = vmatmul.msk.bf16.vlgmr.msra.gmra.mxu2 %vm366_vm0, %v849_v6  ;;  %v848_v11 = vld [vmem:[%s300_s12 + $0x10] sm:$0xff]  ;;  %v851_v12 = vld [vmem:[%s300_s12 + $0x28] sm:$0xff]  ;;  %s841_s11 = sshll.u32 %s629_s10, 3 }
  0x38   : > { %830 = vmatmul.msk.bf16.vlgmr.msra.gmra.mxu3 %vm366_vm0, %v852_v7  ;;  %s631_s5 = scalar_lea.hbm %s1411_s4, %s841_s11 }
  0x39   : > { %s634_s2 = sshll.u32 %s631_s5, 4  ;;  %s635_s2 = int_to_ptr.hbm [resolvable:$true] %s634_s2 }
  0x3a   : > { %s984_s26 = sshra.s32 %s635_s2, 4  ;;  %s985_s26 = int_to_ptr.hbm [resolvable:$true] %s984_s26 }
  0x3b   : > { %s986_s24 = scalar_lea.hbm %s985_s26, 128  ;;  %p991_p5 = scmp.lt.s32.totalorder %s985_s26, %s1411_s4 }
  0x3c   : > { %p987_p2 = scmp.ne.s32.totalorder %s985_s26, %s986_s24 }
  0x3e   : > { %p988_p3 = pnand %p987_p2, %p1186_p8 }
  0x40   : > { %p989_p4 = pneg %p988_p3 }
  0x47   : > { %825 = vmatmul.msk.bf16.gmra.mxu0 %vm366_vm0, %v847_v8  ;;  %828 = vmatmul.msk.bf16.gmra.mxu2 %vm366_vm0, %v850_v9 }
  0x48   : > { %831 = vmatmul.msk.bf16.gmra.mxu3 %vm366_vm0, %v853_v10 }
  0x57   : > { %826 = vmatmul.msk.bf16.gmra.mxu0 %vm366_vm0, %v848_v11  ;;  %829 = vmatmul.msk.bf16.gmra.mxu2 %vm366_vm0, %v851_v12 }
  0xb4   : > { %v400_v13 = vpop.f32.mrf.mxu0 }
  0xba   : > { %v415_v14 = vpop.f32.mrf.mxu2 }
  0xbb   : > { %v1239_v18 = vpop.f32.mrf.mxu3 }
  0xbc   : > { %v402_v15 = vpop.f32.mrf.mxu0 }
  0xc2   : > { %v417_v16 = vpop.f32.mrf.mxu2 }
  0xc3   : > { %v1243_v21 = vpop.f32.mrf.mxu3 }
  0xc4   : > { %v405_v17 = vpop.f32.mrf.mxu0 }
  0xc5   : > { %v442_v29 = vmax.f32 %v405_v17, %v415_v14 }
  0xca   : > { %v1241_v19 = vpop.f32.mrf.mxu2 }
  0xcb   : > { %v1247_v24 = vpop.f32.mrf.mxu3 }
  0xcc   : > { %v407_v20 = vpop.f32.mrf.mxu0 }
  0xcd   : > { %v443_v31 = vmax.f32 %v407_v20, %v417_v16 }
  0xd2   : > { %v1245_v22 = vpop.f32.mrf.mxu2 }
  0xd3   : > { %v1258_v37 = vpop.f32.mrf.mxu3 }
  0xd4   : > { %v410_v23 = vpop.f32.mrf.mxu0 }
  0xd5   : > { %v440_v27 = vmax.f32 %v400_v13, %v410_v23 }
  0xd7   : > { %v444_v32 = vmax.f32 %v440_v27, %v1241_v19 }
  0xd9   : > { %v448_v38 = vmax.f32 %v444_v32, %v1239_v18 }
  0xda   : > { %v1249_v25 = vpop.f32.mrf.mxu2 }
  0xdb   : > { %v446_v33 = vmax.f32 %v442_v29, %v1249_v25 }
  0xdc   : > { %v412_v26 = vpop.f32.mrf.mxu0 }
  0xdd   : > { %v441_v28 = vmax.f32 %v402_v15, %v412_v26  ;;  %v450_v39 = vmax.f32 %v446_v33, %v1247_v24 }
  0xdf   : > { %v445_v30 = vmax.f32 %v441_v28, %v1245_v22 }
  0xe1   : > { %v449_v35 = vmax.f32 %v445_v30, %v1243_v21 }
  0xe2   : > { %v1254_v34 = vpop.f32.mrf.mxu2 }
  0xe3   : > { %v447_v36 = vmax.f32 %v443_v31, %v1254_v34  ;;  %v452_v41 = vmax.f32 %v448_v38, %v449_v35 }
  0xe5   : > { %v451_v40 = vmax.f32 %v447_v36, %v1258_v37 }
  0xe7   : > { %v453_v42 = vmax.f32 %v450_v39, %v451_v40 }
  0xe9   : > { %v454_v43 = vmax.f32 %v452_v41, %v453_v42 }
  0xeb   : > { %v455_v44 = vrot.slane %v454_v43, 4 }
  0xed   : > { %v456_v45 = vmax.f32 %v454_v43, %v455_v44 }
  0xef   : > { %v457_v46 = vrot.slane %v456_v45, 2 }
  0xf1   : > { %v458_v47 = vmax.f32 %v456_v45, %v457_v46 }
  0xf3   : > { %v459_v48 = vrot.slane %v458_v47, 1 }
  0xf5   : > { %v1263_v49 = vmax.f32 %v458_v47, %v459_v48 }
  0xf7   : > { %v461_v50 = vsub.f32 %v400_v13, %v1263_v49  ;;  %v462_v51 = vsub.f32 %v402_v15, %v1263_v49  ;;  %v463_v52 = vsub.f32 %v405_v17, %v1263_v49  ;;  %v464_v53 = vsub.f32 %v407_v20, %v1263_v49 }
  0xf8   : > { %v465_v56 = vsub.f32 %v410_v23, %v1263_v49  ;;  %v466_v58 = vsub.f32 %v412_v26, %v1263_v49  ;;  %v467_v60 = vsub.f32 %v415_v14, %v1263_v49  ;;  %v468_v62 = vsub.f32 %v417_v16, %v1263_v49 }
  0xf9   : > { %v477_v54 = vmul.f32 1.442695, %v461_v50  ;;  %v479_v55 = vmul.f32 1.442695, %v462_v51  ;;  %v481_v57 = vmul.f32 1.442695, %v463_v52  ;;  %v469_v4 = vsub.f32 %v1241_v19, %v1263_v49 }
  0xfa   : > { %v483_v59 = vmul.f32 1.442695, %v464_v53  ;;  %v485_v61 = vmul.f32 1.442695, %v465_v56  ;;  %v487_v63 = vmul.f32 1.442695, %v466_v58  ;;  %v470_v8 = vsub.f32 %v1245_v22, %v1263_v49 }
  0xfb   : > { %936 = vpow2.f32 %v477_v54  ;;  %v489_v5 = vmul.f32 1.442695, %v467_v60  ;;  %v491_v9 = vmul.f32 1.442695, %v468_v62  ;;  %v471_v12 = vsub.f32 %v1249_v25, %v1263_v49 }
  0xfc   : > { %938 = vpow2.f32 %v479_v55  ;;  %v493_v13 = vmul.f32 1.442695, %v469_v4  ;;  %v472_v16 = vsub.f32 %v1254_v34, %v1263_v49  ;;  %v495_v17 = vmul.f32 1.442695, %v470_v8 }
  0xfd   : > { %940 = vpow2.f32 %v481_v57  ;;  %v473_v22 = vsub.f32 %v1239_v18, %v1263_v49  ;;  %v497_v23 = vmul.f32 1.442695, %v471_v12  ;;  %v474_v27 = vsub.f32 %v1243_v21, %v1263_v49 }
  0xfe   : > { %942 = vpow2.f32 %v483_v59  ;;  %v499_v28 = vmul.f32 1.442695, %v472_v16  ;;  %v475_v32 = vsub.f32 %v1247_v24, %v1263_v49  ;;  %v476_v35 = vsub.f32 %v1258_v37, %v1263_v49 }
  0xff   : > { %944 = vpow2.f32 %v485_v61  ;;  %v501_v31 = vmul.f32 1.442695, %v473_v22  ;;  %v503_v18 = vmul.f32 1.442695, %v474_v27 }
 0x100   : > { %946 = vpow2.f32 %v487_v63  ;;  %v505_v21 = vmul.f32 1.442695, %v475_v32  ;;  %v507_v41 = vmul.f32 1.442695, %v476_v35 }
 0x101   : > { %v1273_v0 = vpop.eup %936  ;;  %948 = vpow2.f32 %v489_v5 }
 0x102   : > { %v1275_v1 = vpop.eup %938  ;;  %950 = vpow2.f32 %v491_v9 }
 0x103   : > { %v509_v6 = vadd.f32 %v1275_v1, %v1273_v0  ;;  %v1281_v7 = vpop.eup %940  ;;  %952 = vpow2.f32 %v493_v13 }
 0x104   : > { %v1286_v11 = vpop.eup %942  ;;  %954 = vpow2.f32 %v495_v17 }
 0x105   : > { %v510_v10 = vadd.f32 %v1281_v7, %v509_v6  ;;  %v1291_v15 = vpop.eup %944  ;;  %956 = vpow2.f32 %v497_v23 }
 0x106   : > { %v1296_v20 = vpop.eup %946  ;;  %958 = vpow2.f32 %v499_v28 }
 0x107   : > { %v511_v14 = vadd.f32 %v1286_v11, %v510_v10  ;;  %v949_v26 = vpop.eup %948  ;;  %960 = vpow2.f32 %v501_v31 }
 0x108   : > { %v951_v30 = vpop.eup %950  ;;  %962 = vpow2.f32 %v503_v18 }
 0x109   : > { %v512_v19 = vadd.f32 %v1291_v15, %v511_v14  ;;  %v953_v34 = vpop.eup %952  ;;  %964 = vpow2.f32 %v505_v21 }
 0x10a   : > { %v955_v38 = vpop.eup %954  ;;  %966 = vpow2.f32 %v507_v41 }
 0x10b   : > { %v513_v25 = vadd.f32 %v1296_v20, %v512_v19  ;;  %v957_v40 = vpop.eup %956 }
 0x10c   : > { %v959_v43 = vpop.eup %958 }
 0x10d   : > { %v514_v29 = vadd.f32 %v949_v26, %v513_v25  ;;  %v961_v24 = vpop.eup %960 }
 0x10e   : > { %v963_v46 = vpop.eup %962 }
 0x10f   : > { %v515_v33 = vadd.f32 %v951_v30, %v514_v29  ;;  %v965_v48 = vpop.eup %964 }
 0x110   : > { %v967_v49 = vpop.eup %966 }
 0x111   : > { %v516_v36 = vadd.f32 %v953_v34, %v515_v33 }
 0x113   : > { %v517_v39 = vadd.f32 %v955_v38, %v516_v36 }
 0x115   : > { %v518_v42 = vadd.f32 %v957_v40, %v517_v39 }
 0x117   : > { %v519_v44 = vadd.f32 %v959_v43, %v518_v42 }
 0x119   : > { %v520_v45 = vadd.f32 %v961_v24, %v519_v44 }
 0x11b   : > { %v521_v47 = vadd.f32 %v963_v46, %v520_v45 }
 0x11d   : > { %v522_v37 = vadd.f32 %v965_v48, %v521_v47 }
 0x11f   : > { %v523_v50 = vadd.f32 %v967_v49, %v522_v37 }
 0x121   : > { %v524_v51 = vrot.slane %v523_v50, 4 }
 0x123   : > { %v525_v52 = vadd.f32 %v524_v51, %v523_v50 }
 0x125   : > { %v526_v53 = vrot.slane %v525_v52, 2 }
 0x127   : > { %v527_v54 = vadd.f32 %v526_v53, %v525_v52 }
 0x129   : > { %v528_v55 = vrot.slane %v527_v54, 1 }
 0x12b   : > { %v529_v56 = vadd.f32 %v528_v55, %v527_v54 }
 0x12d   : > { %968 = vrcp.f32 %v529_v56 }
 0x133   : > { %v969_v57 = vpop.eup %968 }
 0x134   : > { %v545_v58 = vmul.f32 %v969_v57, %v965_v48  ;;  %v546_v59 = vmul.f32 %v969_v57, %v967_v49  ;;  %v543_v60 = vmul.f32 %v969_v57, %v961_v24  ;;  %v544_v61 = vmul.f32 %v969_v57, %v963_v46 }
 0x135   : > { %v541_v62 = vmul.f32 %v969_v57, %v957_v40  ;;  %v537_v5 = vmul.f32 %v969_v57, %v949_v26  ;;  %v538_v6 = vmul.f32 %v969_v57, %v951_v30  ;;  %v542_v8 = vmul.f32 %v969_v57, %v959_v43 }
 0x136   : > { %v556_v63 = vpack.c.bf16 %v546_v59, %v545_v58  ;;  %593 = vst [vmem:[%s1308_s14 + $0x70] sm:$0xff] %v545_v58  ;;  %v555_v4 = vpack.c.bf16 %v544_v61, %v543_v60  ;;  %v539_v9 = vmul.f32 %v969_v57, %v953_v34  ;;  %v533_v12 = vmul.f32 %v969_v57, %v1281_v7 }
 0x137   : > { %594 = vst [vmem:[%s1308_s14 + $0x78] sm:$0xff] %v546_v59  ;;  %v552_v10 = vpack.c.bf16 %v538_v6, %v537_v5  ;;  %v534_v13 = vmul.f32 %v969_v57, %v1286_v11  ;;  %v540_v14 = vmul.f32 %v969_v57, %v955_v38  ;;  %v531_v16 = vmul.f32 %v969_v57, %v1273_v0 }
 0x138   : > { %563 = vmatpush.bf16.msra.mxu1 %v556_v63  ;;  %591 = vst [vmem:[%s1308_s14 + $0x60] sm:$0xff] %v543_v60  ;;  %v532_v17 = vmul.f32 %v969_v57, %v1275_v1  ;;  %v535_v7 = vmul.f32 %v969_v57, %v1291_v15  ;;  %v536_v11 = vmul.f32 %v969_v57, %v1296_v20  ;;  %v854_v20 = vld [vmem:[%s305_s6] sm:$0xff]  ;;  %s990_s6 = scalar_lea.hbm %s1411_s4, 1024 }
 0x139   : > { %592 = vst [vmem:[%s1308_s14 + $0x68] sm:$0xff] %v544_v61  ;;  %v550_v19 = vpack.c.bf16 %v534_v13, %v533_v12  ;;  %v554_v0 = vpack.c.bf16 %v542_v8, %v541_v62  ;;  %v553_v1 = vpack.c.bf16 %v540_v14, %v539_v9  ;;  %p992_p6 = scmp.lt.s32.totalorder %s990_s6, %s986_s24 }
 0x13a   : > { %589 = vst [vmem:[%s1308_s14 + $0x50] sm:$0xff] %v541_v62  ;;  %v549_v22 = vpack.c.bf16 %v532_v17, %v531_v16  ;;  %v551_v15 = vpack.c.bf16 %v536_v11, %v535_v7 }
 0x13b   : > { %590 = vst [vmem:[%s1308_s14 + $0x58] sm:$0xff] %v542_v8  ;;  %p993_p7 = por %p992_p6, %p991_p5 }
 0x13c   : > { %564 = vmatpush.bf16.msra.mxu1 %v555_v4  ;;  %587 = vst [vmem:[%s1308_s14 + $0x40] sm:$0xff] %v539_v9 }
 0x13d   : > { %588 = vst [vmem:[%s1308_s14 + $0x48] sm:$0xff] %v540_v14  ;;  %p994_p10 = pnand %p993_p7, %p989_p4 }
 0x13e   : > { %585 = vst [vmem:[%s1308_s14 + $0x30] sm:$0xff] %v537_v5 }
 0x13f   : > { %586 = vst [vmem:[%s1308_s14 + $0x38] sm:$0xff] %v538_v6 }
 0x140   : > { %565 = vmatpush.bf16.msra.mxu1 %v554_v0  ;;  %583 = vst [vmem:[%s1308_s14 + $0x20] sm:$0xff] %v535_v7 }
 0x141   : > { %584 = vst [vmem:[%s1308_s14 + $0x28] sm:$0xff] %v536_v11 }
 0x142   : > { %581 = vst [vmem:[%s1308_s14 + $0x10] sm:$0xff] %v533_v12 }
 0x143   : > { %582 = vst [vmem:[%s1308_s14 + $0x18] sm:$0xff] %v534_v13 }
 0x144   : > { %566 = vmatpush.bf16.msra.mxu1 %v553_v1  ;;  %579 = vst [vmem:[%s1308_s14] sm:$0xff] %v531_v16 }
 0x145   : > { %580 = vst [vmem:[%s1308_s14 + $0x8] sm:$0xff] %v532_v17 }
 0x148   : > { %567 = vmatpush.bf16.msra.mxu1 %v552_v10 }
 0x14c   : > { %568 = vmatpush.bf16.msra.mxu1 %v551_v15 }
 0x150   : > { %569 = vmatpush.bf16.msra.mxu1 %v550_v19 }
 0x154   : > { %570 = vmatpush.bf16.msra.mxu1 %v549_v22 }
 0x157   : > { %571 = vmatmul.bf16.vlgmr.msra.gmra.mxu1 %v854_v20 }
 0x158   : > { %997 = shalt.err (!%p994_p10)
}
 0x159   : > { %s1098_s5 = smov 128   ;;  %s1099_s14 = smov 512  }
 0x15a   : > { %s1100_s11 = smov 8   ;;  %s838_s12 = sshll.u32 %s1084_s19, 3 }
 0x15b   : > { %858 = dma.vmem_to_hbm [thread:$0]  (%p1186_p8), %s633_s0, 2048, %s635_s2, %s601_s7, %s1098_s5, %s1099_s14, %s1100_s11  }
 0x15c   : > { %s611_s13 = sadd.s32 %s1080_s18, %s838_s12  ;;  %s1424_s24 = sshll.u32 %s1212_s28, 4 }
 0x15d   : > { %s839_s26 = sshll.u32 %s611_s13, 3  ;;  %s288_s23 = scalar_lea.vmem [#allocation3], %s1424_s24 }
 0x15e   : > { %s613_s9 = scalar_lea.hbm %s1410_s3, %s839_s26  ;;  %s614_s10 = sshll.u32 %s288_s23, 4  ;;  %s615_s10 = int_to_ptr.vmem [resolvable:$true] %s614_s10 }
 0x15f   : > { %s616_s1 = sshll.u32 %s613_s9, 4  ;;  %s596_s0 = scalar_lea.sflag [#allocation4], %s1212_s28  ;;  %s617_s1 = int_to_ptr.hbm [resolvable:$true] %s616_s1 }
 0x160   : > { %s1012_s2 = sshra.s32 %s617_s1, 4  ;;  %s1018_s12 = scalar_lea.hbm %s1410_s3, 128  ;;  %s1013_s2 = int_to_ptr.hbm [resolvable:$true] %s1012_s2 }
 0x161   : > { %s1014_s18 = scalar_lea.hbm %s1013_s2, 16  ;;  %p1019_p0 = scmp.lt.s32.totalorder %s1013_s2, %s1410_s3 }
 0x162   : > { %p1015_p11 = scmp.ne.s32.totalorder %s1013_s2, %s1014_s18  ;;  %p1020_p1 = scmp.lt.s32.totalorder %s1018_s12, %s1014_s18 }
 0x164   : > { %p1016_p12 = pnand %p1015_p11, %p1186_p8  ;;  %p1021_p2 = por %p1020_p1, %p1019_p0 }
 0x166   : > { %p1017_p13 = pneg %p1016_p12 }
 0x168   : > { %p1022_p3 = pnand %p1021_p2, %p1017_p13 }
 0x1d4   : > { %v572_v23 = vpop.f32.mrf.mxu1 }
 0x1d5   : > { %v573_v25 = vadd.f32 %v572_v23, %v1218_v2 }
 0x1d7   : > { %577 = vst [vmem:[%s288_s23] sm:$0xff] %v573_v25 }
 0x1dc   : > { %v574_v26 = vpop.f32.mrf.mxu1 }
 0x1dd   : > { %v575_v27 = vadd.f32 %v574_v26, %v1220_v3 }
 0x1df   : > { %578 = vst [vmem:[%s288_s23 + $0x8] sm:$0xff] %v575_v27 }
 0x1e0   : > { %1025 = shalt.err (!%p1022_p3)
}
 0x1e1   : > { %857 = dma.vmem_to_hbm [thread:$0]  (%p1186_p8), %s615_s10, 256, %s617_s1, %s596_s0, %s1098_s5, %s1099_s14, %s1100_s11  }
 0x1e2 PF: > { %p868_p4 = scmp.ge.s32.totalorder %s1096_s22, 2  ;;  %s649_s28 = sand.u32 1, %s1068_s15  }
 0x1e3   : > { %s650_s24 = scalar_lea.sflag [#allocation4], %s649_s28 }
 0x1e4   : > { %p862_p5 = pnand %p868_p4, %p1190_p9 }
 0x1e6   : > { %p863_p6 = pneg %p862_p5 }
 0x1e8   : > { %1059 = dma.done.wait (%p863_p6), %s650_s24, 256  }
 0x1e9   : > { %1061 = vsyncadd (%p863_p6), %s650_s24, 4294967040  ;;  %s660_s23 = scalar_lea.sflag [#allocation6], %s649_s28 }
 0x1ea   : > { %1063 = dma.done.wait (%p863_p6), %s660_s23, 2048  }
 0x1eb   : > { %1065 = vsyncadd (%p863_p6), %s660_s23, 4294965248  ;;  %s21_s22 = sadd.s32 1, %s1096_s22   ;;  %s1425_s1 = sld [smem:[#allocation9_spill]] }
 0x1ec   : > { %p18_p7 = scmp.ge.s32.totalorder %s21_s22, 10   ;;  %s1426_s15 = smov %s1072_s16 }
 0x1ed   : > { %s1427_s16 = smov %s1076_s17  ;;  %s1428_s17 = smov %s1198_s8 }
 0x1ee   : > { %s1429_s18 = smov %s1088_s20  ;;  %s1430_s19 = smov %s1092_s21 }
 0x1ef   : > { %s1431_s20 = smov %s1434_s25  ;;  %20 = sbr.rel (!%p18_p7) target bundleno = 11 (0xb), region = 133 }
 0x1f1   : > { %s1432_s21 = smov %s1425_s1 }
 0x1f4   :  { %666 = vsyncpa [#allocation4], 1 }
 0x1f5   :  { %668 = vsyncpa [#allocation4 + $0x1], 1 }
 0x1f6   :  { %669 = vsyncpa [#allocation6], 1 }
 0x1f7   :  { %671 = vsyncpa [#allocation6 + $0x1], 1 }

</bundles_post_ra>
